<compile_context>
chip_gen: v7x
topology: tpu7x:2x2x1
jax: 0.10.0
libtpu: 0.0.40
codegen_flags: <defaults>
</compile_context>

<pallas_src>
import jax
import jax.numpy as jnp
from jax.experimental import pallas as pl
from jax.experimental.pallas import tpu as pltpu


def _action_loss_kernel(logits_ref, tgt_ref, mask_ref, weight_ref, out_ref):
    logits = logits_ref[...].astype(jnp.float32)            # (TILE_N, V) f32
    tgt = tgt_ref[...]                                       # (TILE_N, 1) int32

    vocab_iota = jax.lax.broadcasted_iota(jnp.int32, logits.shape, 1)
    onehot = (vocab_iota == tgt).astype(jnp.float32)         # (TILE_N, V)

    # numerically-stable log-softmax pieces; only per-row scalars materialized
    m = jnp.max(logits, axis=-1, keepdims=True)              # (TILE_N, 1)
    sumexp = jnp.sum(jnp.exp(logits - m), axis=-1, keepdims=True)
    lse = jnp.log(sumexp)                                    # (TILE_N, 1)

    # gather the target logit / class weight without building logprobs tile
    tgt_logit = jnp.sum(onehot * logits, axis=-1, keepdims=True)   # (TILE_N, 1)
    tgt_logprob = tgt_logit - m - lse                               # (TILE_N, 1)

    w = weight_ref[...].astype(jnp.float32)                  # (1, V), resident
    tgt_w = jnp.sum(onehot * w, axis=-1, keepdims=True)      # (TILE_N, 1)
    maskf = mask_ref[...].astype(jnp.float32)                # (TILE_N, 1)

    num = jnp.sum(-tgt_logprob * tgt_w * maskf)              # tile partial num
    den = jnp.sum(tgt_w * maskf)                             # tile partial den

    # lane-dense per-tile partial output: sublane 0 = num, sublane 1 = den
    sub = jax.lax.broadcasted_iota(jnp.int32, out_ref.shape, 1)   # (1, 2, 128)
    out_ref[...] = jnp.where(sub == 0, num, den)


def _pick_tile_n(N, V, itemsize, budget_bytes=12 * 1024 * 1024):
    """Largest row tile s.t. the double-buffered logits tile fits the budget."""
    max_rows = max(16, budget_bytes // (2 * V * itemsize))
    tile = int(min(1024, max_rows))
    tile -= tile % 16                      # sublane-safe for f32 and bf16
    tile = max(tile, 16)
    n_round16 = ((N + 15) // 16) * 16      # don't pad tiny problems way up
    return min(tile, n_round16)


def action_loss(logits, action_ids, mask, class_weight=None):
    """logits: (B, S, V) float; action_ids: (B, S) int; mask: (B, S) bool."""
    B, S, V = logits.shape
    N = B * S
    itemsize = jnp.dtype(logits.dtype).itemsize
    tile_n = _pick_tile_n(N, V, itemsize)

    N_pad = ((N + tile_n - 1) // tile_n) * tile_n
    num_tiles = N_pad // tile_n

    logits2d = logits.reshape(N, V)                    # keep input dtype (bf16 ok)
    tgt2d = action_ids.reshape(N, 1).astype(jnp.int32)
    mask2d = mask.reshape(N, 1).astype(jnp.int32)
    if N_pad != N:
        pad = N_pad - N
        logits2d = jnp.pad(logits2d, ((0, pad), (0, 0)))
        tgt2d = jnp.pad(tgt2d, ((0, pad), (0, 0)))
        mask2d = jnp.pad(mask2d, ((0, pad), (0, 0)))   # pad rows -> mask 0

    if class_weight is None:
        class_weight = jnp.ones((V,), dtype=jnp.float32)
    weight2d = class_weight.reshape(1, V).astype(jnp.float32)

    partials = pl.pallas_call(
        _action_loss_kernel,
        out_shape=jax.ShapeDtypeStruct((num_tiles, 2, 128), jnp.float32),
        grid_spec=pltpu.PrefetchScalarGridSpec(
            num_scalar_prefetch=0,
            grid=(num_tiles,),
            in_specs=[
                pl.BlockSpec((tile_n, V), lambda i: (i, 0)),   # logits tile
                pl.BlockSpec((tile_n, 1), lambda i: (i, 0)),   # targets tile
                pl.BlockSpec((tile_n, 1), lambda i: (i, 0)),   # mask tile
                pl.BlockSpec((1, V), lambda i: (0, 0)),        # class_weight (resident)
            ],
            out_specs=pl.BlockSpec((1, 2, 128), lambda i: (i, 0, 0)),
        ),
        compiler_params=pltpu.CompilerParams(
            dimension_semantics=("parallel",),      # independent tiles -> megacore
            vmem_limit_bytes=48 * 1024 * 1024),
    )(logits2d, tgt2d, mask2d, weight2d)

    num = jnp.sum(partials[:, 0, 0])
    den = jnp.sum(partials[:, 1, 0])
    return num / den


def _reference_loss(logits, action_ids, mask, class_weight):
    """Pure-JAX reference of masked, class-weighted CrossEntropyLoss(mean)."""
    lp = jax.nn.log_softmax(logits.astype(jnp.float32), axis=-1)
    tgt_lp = jnp.take_along_axis(lp, action_ids[..., None], axis=-1)[..., 0]
    w = class_weight[action_ids]
    m = mask.astype(jnp.float32)
    return jnp.sum(-tgt_lp * w * m) / jnp.sum(w * m)


if __name__ == "__main__":
    key = jax.random.PRNGKey(0)
    B, S, V = 2, 8, 32   # batch=2, seq=8, num action classes=32
    k1, k2, k3, k4 = jax.random.split(key, 4)

    logits = jax.random.normal(k1, (B, S, V), dtype=jnp.float32)
    action_ids = jax.random.randint(k2, (B, S), 0, V, dtype=jnp.int32)
    mask = jax.random.uniform(k3, (B, S)) > 0.2
    class_weight = 0.5 + jax.random.uniform(k4, (V,), dtype=jnp.float32)

    loss = action_loss(logits, action_ids, mask, class_weight)
    loss = jax.block_until_ready(loss)

    ref = _reference_loss(logits, action_ids, mask, class_weight)
    assert jnp.allclose(loss, ref, rtol=1e-5, atol=1e-5), (loss, ref)

    # also exercise the None-class_weight path and a non-tile-aligned N
    loss2 = jax.block_until_ready(action_loss(logits[:, :5], action_ids[:, :5],
                                              mask[:, :5], None))
    ref2 = _reference_loss(logits[:, :5], action_ids[:, :5], mask[:, :5],
                           jnp.ones((V,), jnp.float32))
    assert jnp.allclose(loss2, ref2, rtol=1e-5, atol=1e-5), (loss2, ref2)

    print("KERNEL_OK")
</pallas_src>

<mosaic_0001>
module attributes {stable_mosaic.version = 11 : i64} {
  func.func @_action_loss_kernel(%arg0: i32, %arg1: memref<16x32xf32, #tpu.memory_space<vmem>>, %arg2: memref<16x1xi32, #tpu.memory_space<vmem>>, %arg3: memref<16x1xi32, #tpu.memory_space<vmem>>, %arg4: memref<1x32xf32, #tpu.memory_space<vmem>>, %arg5: memref<1x2x128xf32, #tpu.memory_space<vmem>>) attributes {dimension_semantics = [#tpu.dimension_semantics<parallel>], iteration_bounds = array<i64: 1>, scalar_prefetch = 0 : i64, scratch_operands = 0 : i64, tpu.core_type = #tpu.core_type<tc>, window_params = [{transform_indices = @transform_0, window_bounds = array<i64: 16, 32>}, {transform_indices = @transform_1, window_bounds = array<i64: 16, 1>}, {transform_indices = @transform_2, window_bounds = array<i64: 16, 1>}, {pipeline_mode = #tpu.pipeline_mode<synchronous>, transform_indices = @transform_3, window_bounds = array<i64: 1, 32>}, {transform_indices = @transform_4, window_bounds = array<i64: 1, 2, 128>}]} {
    %c0 = arith.constant 0 : index
    %c0_0 = arith.constant 0 : index
    %0 = vector.load %arg1[%c0, %c0_0] : memref<16x32xf32, #tpu.memory_space<vmem>>, vector<16x32xf32>
    %c0_1 = arith.constant 0 : index
    %c0_2 = arith.constant 0 : index
    %1 = vector.load %arg2[%c0_1, %c0_2] : memref<16x1xi32, #tpu.memory_space<vmem>>, vector<16x1xi32>
    %2 = tpu.iota {dimensions = array<i32: 1>} : vector<16x32xi32>
    %3 = vector.broadcast %1 : vector<16x1xi32> to vector<16x32xi32>
    %4 = arith.cmpi eq, %2, %3 : vector<16x32xi32>
    %5 = arith.extui %4 : vector<16x32xi1> to vector<16x32xi32>
    %6 = arith.sitofp %5 : vector<16x32xi32> to vector<16x32xf32>
    %cst = arith.constant dense<0xFF800000> : vector<16xf32>
    %7 = vector.multi_reduction <maximumf>, %0, %cst [1] : vector<16x32xf32> to vector<16xf32>
    %8 = vector.shape_cast %7 : vector<16xf32> to vector<16x1xf32>
    %9 = vector.broadcast %8 : vector<16x1xf32> to vector<16x32xf32>
    %10 = arith.subf %0, %9 : vector<16x32xf32>
    %11 = math.exp %10 : vector<16x32xf32>
    %cst_3 = arith.constant dense<0.000000e+00> : vector<16xf32>
    %12 = vector.multi_reduction <add>, %11, %cst_3 [1] : vector<16x32xf32> to vector<16xf32>
    %13 = vector.shape_cast %12 : vector<16xf32> to vector<16x1xf32>
    %14 = math.log %13 : vector<16x1xf32>
    %15 = arith.mulf %6, %0 : vector<16x32xf32>
    %cst_4 = arith.constant dense<0.000000e+00> : vector<16xf32>
    %16 = vector.multi_reduction <add>, %15, %cst_4 [1] : vector<16x32xf32> to vector<16xf32>
    %17 = vector.shape_cast %16 : vector<16xf32> to vector<16x1xf32>
    %18 = arith.subf %17, %8 : vector<16x1xf32>
    %19 = arith.subf %18, %14 : vector<16x1xf32>
    %c0_5 = arith.constant 0 : index
    %c0_6 = arith.constant 0 : index
    %20 = vector.load %arg4[%c0_5, %c0_6] : memref<1x32xf32, #tpu.memory_space<vmem>>, vector<1x32xf32>
    %21 = vector.broadcast %20 : vector<1x32xf32> to vector<16x32xf32>
    %22 = arith.mulf %6, %21 : vector<16x32xf32>
    %cst_7 = arith.constant dense<0.000000e+00> : vector<16xf32>
    %23 = vector.multi_reduction <add>, %22, %cst_7 [1] : vector<16x32xf32> to vector<16xf32>
    %24 = vector.shape_cast %23 : vector<16xf32> to vector<16x1xf32>
    %c0_8 = arith.constant 0 : index
    %c0_9 = arith.constant 0 : index
    %25 = vector.load %arg3[%c0_8, %c0_9] : memref<16x1xi32, #tpu.memory_space<vmem>>, vector<16x1xi32>
    %26 = arith.sitofp %25 : vector<16x1xi32> to vector<16x1xf32>
    %cst_10 = arith.constant 0.000000e+00 : f32
    %27 = vector.broadcast %cst_10 : f32 to vector<16x1xf32>
    %28 = arith.subf %27, %19 : vector<16x1xf32>
    %29 = arith.mulf %28, %24 : vector<16x1xf32>
    %30 = arith.mulf %29, %26 : vector<16x1xf32>
    %31 = vector.shape_cast %30 : vector<16x1xf32> to vector<1x16x1xf32>
    %cst_11 = arith.constant dense<0.000000e+00> : vector<1xf32>
    %32 = vector.multi_reduction <add>, %31, %cst_11 [1, 2] : vector<1x16x1xf32> to vector<1xf32>
    %33 = vector.shape_cast %32 : vector<1xf32> to vector<1x1x1xf32>
    %34 = vector.extract %33[0, 0, 0] : f32 from vector<1x1x1xf32>
    %35 = arith.mulf %24, %26 : vector<16x1xf32>
    %36 = vector.shape_cast %35 : vector<16x1xf32> to vector<1x16x1xf32>
    %cst_12 = arith.constant dense<0.000000e+00> : vector<1xf32>
    %37 = vector.multi_reduction <add>, %36, %cst_12 [1, 2] : vector<1x16x1xf32> to vector<1xf32>
    %38 = vector.shape_cast %37 : vector<1xf32> to vector<1x1x1xf32>
    %39 = vector.extract %38[0, 0, 0] : f32 from vector<1x1x1xf32>
    %40 = tpu.iota {dimensions = array<i32: 1>} : vector<1x2x128xi32>
    %c0_i32 = arith.constant 0 : i32
    %41 = vector.broadcast %c0_i32 : i32 to vector<1x2x128xi32>
    %42 = arith.cmpi eq, %40, %41 : vector<1x2x128xi32>
    %43 = vector.broadcast %34 : f32 to vector<1x2x128xf32>
    %44 = vector.broadcast %39 : f32 to vector<1x2x128xf32>
    %45 = arith.select %42, %43, %44 : vector<1x2x128xi1>, vector<1x2x128xf32>
    %c0_13 = arith.constant 0 : index
    %c0_14 = arith.constant 0 : index
    %c0_15 = arith.constant 0 : index
    %46 = vector.load %arg5[%c0_13, %c0_14, %c0_15] : memref<1x2x128xf32, #tpu.memory_space<vmem>>, vector<1x2x128xf32>
    tpu.vector_store %arg5[%c0_13, %c0_14, %c0_15], %45 {strides = array<i32>} : memref<1x2x128xf32, #tpu.memory_space<vmem>>, vector<1x2x128xf32>,
    return
  }
  func.func @transform_0(%arg0: i32) -> (i32, i32) {
    %c0_i32 = arith.constant 0 : i32
    %c0_i32_0 = arith.constant 0 : i32
    return %arg0, %c0_i32 : i32, i32
  }
  func.func @transform_1(%arg0: i32) -> (i32, i32) {
    %c0_i32 = arith.constant 0 : i32
    %c0_i32_0 = arith.constant 0 : i32
    return %arg0, %c0_i32 : i32, i32
  }
  func.func @transform_2(%arg0: i32) -> (i32, i32) {
    %c0_i32 = arith.constant 0 : i32
    %c0_i32_0 = arith.constant 0 : i32
    return %arg0, %c0_i32 : i32, i32
  }
  func.func @transform_3(%arg0: i32) -> (i32, i32) {
    %c0_i32 = arith.constant 0 : i32
    %c0_i32_0 = arith.constant 0 : i32
    %c0_i32_1 = arith.constant 0 : i32
    return %c0_i32, %c0_i32_0 : i32, i32
  }
  func.func @transform_4(%arg0: i32) -> (i32, i32, i32) {
    %c0_i32 = arith.constant 0 : i32
    %c0_i32_0 = arith.constant 0 : i32
    %c0_i32_1 = arith.constant 0 : i32
    return %arg0, %c0_i32, %c0_i32_0 : i32, i32, i32
  }
}

</mosaic_0001>

<bundles_post_ra>
// kernel: tpu_custom_call.1
= control target key start
LH: loop header
LB: loop body
LE: loop exit
PB: predicated region body
PF: predicated region fallthrough
CT: control target
= control target key end

     0   :  { %vm36_vm0 = vcmask 261120   ;;  %v188_v4 = vmov 0   ;;  %s259_s0 = inlined_call_operand.vmem [shape: f32[16,32], index: 0, kind: input, shape index: {}]   ;;  %s260_s1 = inlined_call_operand.vmem [shape: s32[16,1], index: 1, kind: input, shape index: {}]   ;;  %s261_s2 = inlined_call_operand.vmem [shape: s32[16,1], index: 2, kind: input, shape index: {}]   ;;  %s262_s3 = inlined_call_operand.vmem [shape: f32[1,32], index: 3, kind: input, shape index: {}]   ;;  %s263_s4 = inlined_call_operand.hbm [shape: f32[1,2,128], index: 4, kind: output, shape index: {}]  }
   0x1   :  { %v18_v0 = vld [vmem:[%s259_s0] sm:$0xff]  ;;  %v19_v1 = vld [vmem:[%s259_s0 + $0x8] sm:$0xff]  ;;  %154 = vset.pattern.permute.xlu1 %v188_v4  ;;  %155 = vset.pattern.permute.xlu0 %v188_v4 }
   0x2   :  { %v20_v2 = vld [vmem:[%s260_s1] sm:$0xff]  ;;  %v37_v3 = vsel %vm36_vm0, %v18_v0, -inf }
   0x3   :  { %9 = vsyncpa [#allocation3], 0  ;;  %38 = vmax.xlane.f32.xlu0 %v37_v3  ;;  %25 = vperm.xlu1 %154, %v20_v2   ;;  %v40_v5 = vsel %vm36_vm0, %v19_v1, -inf  ;;  %v21_v6 = vld [vmem:[%s260_s1 + $0x8] sm:$0xff]  ;;  %v22_v8 = vlaneseq  ;;  %v189_v17 = vmov 0.0   ;;  %v86_v46 = vld [vmem:[%s261_s2] sm:$0xff] }
   0x4   :  { %v146_v27 = vld [vmem:[%s262_s3] ss:$0 sm:$0xff]  ;;  %v87_v47 = vld [vmem:[%s261_s2 + $0x8] sm:$0xff]  ;;  %v88_v51 = vcvt.s32.f32 %v86_v46  ;;  %vm96_vm3 = vcmask 7168   ;;  %s190_s26 = smov [#allocation2]  }
   0x5   :  { %v23_v13 = vand.u32 127, %v22_v8  ;;  %v89_v52 = vcvt.s32.f32 %v87_v47  ;;  %s136_s27 = sshll.u32 %s190_s26, 4  ;;  %s137_s27 = int_to_ptr.vmem [resolvable:$true] %s136_s27 }
   0x6   :  { %s164_s29 = scalar_lea.vmem %s137_s27, 32  ;;  %p169_p1 = scmp.lt.s32.totalorder %s137_s27, %s137_s27 }
   0x7   :  { %41 = vmax.xlane.f32.xlu0 %v40_v5  ;;  %28 = vperm.xlu1 %154, %v21_v6   ;;  %p165_p0 = scmp.ne.s32.totalorder %s137_s27, %s164_s29  ;;  %p170_p2 = scmp.lt.s32.totalorder %s164_s29, %s164_s29 }
   0x9   :  { %p171_p3 = por %p170_p2, %p169_p1 }
   0xb   :  { %p172_p4 = pnand %p171_p3, %p165_p0 }
  0x82   :  { %v26_v11 = vpop.permute.xlu1 %25 }
  0x83   :  { %vm30_vm1 = vcmp.eq.s32.totalorder %v23_v13, %v26_v11 }
  0x84   :  { %v144_v18 = vsel %vm30_vm1, 1.0, %v189_v17 }
  0x85   :  { %v59_v19 = vmul.f32 %v144_v18, %v18_v0  ;;  %v78_v29 = vmul.f32 %v146_v27, %v144_v18 }
  0x86   :  { %v29_v16 = vpop.permute.xlu1 %28 }
  0x87   :  { %vm31_vm2 = vcmp.eq.s32.totalorder %v23_v13, %v29_v16  ;;  %v61_v23 = vsel %vm36_vm0, %v59_v19, 0.0  ;;  %v80_v30 = vsel %vm36_vm0, %v78_v29, 0.0  ;;  %v124_v16 = vshrl.u32 %v22_v8, 7 }
  0x88   :  { %v145_v21 = vsel %vm31_vm2, 1.0, %v189_v17 }
  0x89   :  { %v60_v24 = vmul.f32 %v145_v21, %v19_v1  ;;  %v79_v31 = vmul.f32 %v146_v27, %v145_v21  ;;  %vm125_vm4 = vcmp.eq.s32.totalorder %v124_v16, 0 }
  0x8b   :  { %v64_v28 = vsel %vm36_vm0, %v60_v24, 0.0  ;;  %v83_v32 = vsel %vm36_vm0, %v79_v31, 0.0 }
  0x90   :  { %v39_v7 = vpop.xlane.xlu0 %38 }
  0x91   :  { %v43_v9 = vsub.f32 %v18_v0, %v39_v7 }
  0x93   :  { %v45_v10 = vmul.f32 1.442695, %v43_v9 }
  0x94   :  { %v42_v12 = vpop.xlane.xlu0 %41 }
  0x95   :  { %156 = vpow2.f32 %v45_v10  ;;  %v44_v14 = vsub.f32 %v19_v1, %v42_v12 }
  0x97   :  { %v47_v15 = vmul.f32 1.442695, %v44_v14 }
  0x99   :  { %158 = vpow2.f32 %v47_v15 }
  0x9f   :  { %v157_v20 = vpop.eup %156 }
  0xa0   :  { %v49_v22 = vsel %vm36_vm0, %v157_v20, 0.0 }
  0xa1   :  { %50 = vadd.xlane.f32.xlu0 %v49_v22 }
  0xa3   :  { %v159_v25 = vpop.eup %158 }
  0xa4   :  { %v52_v26 = vsel %vm36_vm0, %v159_v25, 0.0 }
  0xa5   :  { %62 = vadd.xlane.f32.xlu0 %v61_v23  ;;  %53 = vadd.xlane.f32.xlu1 %v52_v26 }
  0xa9   :  { %65 = vadd.xlane.f32.xlu0 %v64_v28 }
  0xad   :  { %81 = vadd.xlane.f32.xlu0 %v80_v30 }
  0xb1   :  { %84 = vadd.xlane.f32.xlu0 %v83_v32 }
 0x12e   :  { %v51_v33 = vpop.xlane.xlu0 %50 }
 0x12f   :  { %160 = vlog2.f32 %v51_v33 }
 0x132   :  { %v54_v34 = vpop.xlane.xlu1 %53  ;;  %v63_v35 = vpop.xlane.xlu0 %62 }
 0x133   :  { %162 = vlog2.f32 %v54_v34  ;;  %v67_v39 = vsub.f32 %v63_v35, %v39_v7 }
 0x136   :  { %v66_v36 = vpop.xlane.xlu0 %65 }
 0x137   :  { %v68_v45 = vsub.f32 %v66_v36, %v42_v12 }
 0x139   :  { %v161_v37 = vpop.eup %160 }
 0x13a   :  { %v56_v38 = vmul.f32 0.6931472, %v161_v37  ;;  %v82_v42 = vpop.xlane.xlu0 %81 }
 0x13b   :  { %v109_v58 = vmul.f32 %v88_v51, %v82_v42 }
 0x13c   :  { %v69_v40 = vsub.f32 %v67_v39, %v56_v38 }
 0x13d   :  { %v163_v41 = vpop.eup %162  ;;  %v111_v63 = vsel %vm96_vm3, %v109_v58, 0.0 }
 0x13e   :  { %v58_v43 = vmul.f32 0.6931472, %v163_v41  ;;  %v90_v44 = vsub.f32 0.0, %v69_v40  ;;  %v85_v53 = vpop.xlane.xlu0 %84 }
 0x13f   :  { %v110_v57 = vmul.f32 %v89_v52, %v85_v53 }
 0x140   :  { %v70_v48 = vsub.f32 %v68_v45, %v58_v43  ;;  %v92_v49 = vmul.f32 %v90_v44, %v82_v42 }
 0x141   :  { %v112_v62 = vsel %vm96_vm3, %v110_v57, 0.0 }
 0x142   :  { %v91_v50 = vsub.f32 0.0, %v70_v48  ;;  %v94_v54 = vmul.f32 %v92_v49, %v88_v51  ;;  %v113_v0 = vadd.f32 %v112_v62, %v111_v63 }
 0x144   :  { %v93_v55 = vmul.f32 %v91_v50, %v85_v53  ;;  %v97_v59 = vsel %vm96_vm3, %v94_v54, 0.0 }
 0x146   :  { %v95_v56 = vmul.f32 %v93_v55, %v89_v52 }
 0x148   :  { %v98_v60 = vsel %vm96_vm3, %v95_v56, 0.0 }
 0x149   :  { %v99_v61 = vadd.f32 %v98_v60, %v97_v59 }
 0x14b   :  { %100 = vadd.xlane.f32.xlu0 %v99_v61 }
 0x14f   :  { %114 = vadd.xlane.f32.xlu0 %v113_v0 }
 0x1d8   :  { %v101_v1 = vpop.xlane.xlu0 %100 }
 0x1d9   :  { %v102_v2 = vrot.slane %v101_v1, 4 }
 0x1db   :  { %v103_v3 = vadd.f32 %v102_v2, %v101_v1 }
 0x1dc   :  { %v115_v4 = vpop.xlane.xlu0 %114 }
 0x1dd   :  { %v104_v5 = vrot.slane %v103_v3, 2  ;;  %v116_v6 = vrot.slane %v115_v4, 4 }
 0x1df   :  { %v117_v7 = vadd.f32 %v116_v6, %v115_v4  ;;  %v105_v9 = vadd.f32 %v104_v5, %v103_v3 }
 0x1e1   :  { %v118_v10 = vrot.slane %v117_v7, 2  ;;  %v106_v11 = vrot.slane %v105_v9, 1 }
 0x1e3   :  { %v119_v12 = vadd.f32 %v118_v10, %v117_v7  ;;  %v107_v13 = vadd.f32 %v106_v11, %v105_v9 }
 0x1e5   :  { %147 = vpush %v107_v13  ;;  %v120_v14 = vrot.slane %v119_v12, 1 }
 0x1e7   :  { %v121_v15 = vadd.f32 %v120_v14, %v119_v12 }
 0x1e9   :  { %149 = vpush %v121_v15 }
 0x216   :  { %s148_s2 = spop %147 }
 0x217   :  { %v126_v17 = vstv %s148_s2 }
 0x21a   :  { %s150_s28 = spop %149 }
 0x21b   :  { %v127_v18 = vstv %s150_s28 }
 0x21c   :  { %v128_v19 = vsel %vm125_vm4, %v126_v17, %v127_v18 }
 0x21d   :  { %129 = vst [vmem:[#allocation2] sm:$0x3] %v128_v19 }
 0x21e   :  { %175 = shalt.err (!%p172_p4)
}
 0x21f   :  { %s176_s6 = scalar_lea.hbm %s263_s4, 32 }
 0x220   :  { %p177_p5 = scmp.ne.s32.totalorder %s263_s4, %s176_s6  ;;  %p180_p6 = scmp.lt.u32.totalorder %s176_s6, %s263_s4 }
 0x222   :  { %p182_p7 = pnand %p180_p6, %p177_p5 }
 0x224   :  { %185 = shalt.err (!%p182_p7)
}
 0x225   :  { %139 = dma.vmem_to_hbm [thread:$0]  %s137_s27, 32, %s263_s4, [#allocation3]  }
 0x226   :  { %186 = dma.done.wait [#allocation3], 32  }
 0x227   :  { %187 = vsyncadd [#allocation3], 4294967264 }
 0x228   :  { %143 = vsyncpa [#allocation3], 1 }

</bundles_post_ra>
